<compile_context>
chip_gen: v6e
topology: v6e:2x2x1
jax: 0.10.0
libtpu: 0.0.40
codegen_flags: <defaults>
</compile_context>

<pallas_src>
import functools

import jax
import jax.numpy as jnp
from jax.experimental import pallas as pl
from jax.experimental.pallas import tpu as pltpu


def _round_up(x, m):
    return ((x + m - 1) // m) * m


def _vmem_limit_bytes():
    # v5e/v6e: 128 MiB physical VMEM -> raise the scoped limit well past the
    # 16/32 MiB defaults.  v7x: only 64 MiB per TensorCore -> stay conservative.
    cap = 64 << 20
    try:
        cap = int(getattr(pltpu.get_tpu_info(), "vmem_capacity_bytes", cap))
    except Exception:
        pass
    if cap >= (100 << 20):
        return 96 << 20
    return 44 << 20


# ----------------------------------------------------------------------------
# Pallas kernel: fused complex conv, K*K reduction in-kernel
# ----------------------------------------------------------------------------
def _complex_conv_kernel(x_ref, w_ref, b_ref, o_ref, *, K, Wp):
    # x_ref: (1, 2C, S_in)    bf16  one image, channels [real | imag],
    #                               spatial flattened row-major over (Hp, Wp)
    #                               plus a small zero tail.
    # w_ref: (K*K, t_oc, 2C)  bf16  fused [[Wr, -Wi], [Wi, Wr]] per tap.
    # b_ref: (t_oc, 1)        f32   [real_bias | real_bias] (module quirk).
    # o_ref: (1, t_oc, S_out) f32   stride-1 outputs at flat position oh*Wp+ow
    #                               (columns with ow >= OW are garbage).
    t_oc = o_ref.shape[1]
    s_out = o_ref.shape[2]
    acc = jnp.zeros((t_oc, s_out), jnp.float32)
    for kh in range(K):                      # static unroll: K*K small
        for kw in range(K):
            off = kh * Wp + kw               # static flat-spatial offset
            acc = acc + jnp.dot(
                w_ref[kh * K + kw],                      # (t_oc, 2C)
                x_ref[0, :, off:off + s_out],            # (2C,  s_out)
                preferred_element_type=jnp.float32)
    o_ref[0] = acc + b_ref[...]              # lane-broadcast bias add


def _pallas_complex_conv(x_flat, w_fused, b_fused, *, K, Wp, S_out_p):
    N, C2, S_in = x_flat.shape
    KK, OC2p, _ = w_fused.shape

    # Fused output channels live on sublanes; only tile them when large.
    t_oc = OC2p if OC2p <= 256 else 256
    n_oc = OC2p // t_oc
    grid = (N, n_oc)                         # batch outer, oc-tiles inner

    flops = 2 * N * KK * OC2p * C2 * S_out_p
    bytes_accessed = (N * C2 * S_in * 2                      # input, read once
                      + N * n_oc * KK * t_oc * C2 * 2        # weights per step
                      + OC2p * 4                             # bias
                      + N * OC2p * S_out_p * 4)              # output write
    cost = pl.CostEstimate(flops=flops, transcendentals=0,
                           bytes_accessed=bytes_accessed)

    kernel = functools.partial(_complex_conv_kernel, K=K, Wp=Wp)
    return pl.pallas_call(
        kernel,
        out_shape=jax.ShapeDtypeStruct((N, OC2p, S_out_p), jnp.float32),
        grid_spec=pltpu.PrefetchScalarGridSpec(
            num_scalar_prefetch=0,
            grid=grid,
            in_specs=[
                pl.BlockSpec((1, C2, S_in), lambda n, j: (n, 0, 0)),   # input
                pl.BlockSpec((KK, t_oc, C2), lambda n, j: (0, j, 0)),  # weights
                pl.BlockSpec((t_oc, 1), lambda n, j: (j, 0)),          # bias
            ],
            out_specs=pl.BlockSpec((1, t_oc, S_out_p), lambda n, j: (n, j, 0)),
        ),
        compiler_params=pltpu.CompilerParams(
            dimension_semantics=("parallel", "parallel"),
            vmem_limit_bytes=_vmem_limit_bytes(),
        ),
        cost_estimate=cost,
    )(x_flat, w_fused, b_fused)


# ----------------------------------------------------------------------------
# Wrapper: forward pass of ComplexConv2d
# ----------------------------------------------------------------------------
@functools.partial(jax.jit, static_argnames=("stride", "padding"))
def complex_conv2d(x_real, x_imag, real_weight, imag_weight,
                   real_bias, imag_bias, *, stride=1, padding=0):
    """Inputs NCHW f32, weights OIHW f32 -> complex64 NCHW output."""
    del imag_bias  # module quirk: imag_bias is a parameter but unused in forward
    N, Cin, H, W = x_real.shape
    OC, _, K, _ = real_weight.shape
    C2 = 2 * Cin
    Hp, Wp = H + 2 * padding, W + 2 * padding
    OH1, OW1 = Hp - K + 1, Wp - K + 1        # stride-1 output extent

    # -- input: stack [real|imag] channels, pad spatially, flatten (Hp, Wp) --
    x = jnp.concatenate([x_real, x_imag], axis=1).astype(jnp.bfloat16)
    if padding > 0:
        x = jnp.pad(x, ((0, 0), (0, 0),
                        (padding, padding), (padding, padding)))
    x_flat = x.reshape(N, C2, Hp * Wp)

    S_out_p = _round_up(OH1 * Wp, 128)                         # lane-dense out
    S_in = _round_up(max(Hp * Wp, S_out_p + (K - 1) * (Wp + 1)), 128)
    if S_in > Hp * Wp:
        x_flat = jnp.pad(x_flat, ((0, 0), (0, 0), (0, S_in - Hp * Wp)))

    # -- fused weights: out = [[Wr, -Wi], [Wi, Wr]] @ [xr; xi], bias [br; br] --
    OC2 = 2 * OC
    OC2p = _round_up(OC2, 8)                 # channels on sublanes: pad to 8
    if OC2p > 256:
        OC2p = _round_up(OC2p, 256)          # make divisible by the oc tile
    wr = real_weight.transpose(2, 3, 0, 1).reshape(K * K, OC, Cin)
    wi = imag_weight.transpose(2, 3, 0, 1).reshape(K * K, OC, Cin)
    w_fused = jnp.concatenate(
        [jnp.concatenate([wr, -wi], axis=2),                   # real rows
         jnp.concatenate([wi, wr], axis=2)], axis=1)           # imag rows
    w_fused = jnp.pad(w_fused,
                      ((0, 0), (0, OC2p - OC2), (0, 0))).astype(jnp.bfloat16)

    br = real_bias.astype(jnp.float32)
    b_fused = jnp.pad(jnp.concatenate([br, br]),
                      (0, OC2p - OC2)).reshape(OC2p, 1)

    out = _pallas_complex_conv(x_flat, w_fused, b_fused,
                               K=K, Wp=Wp, S_out_p=S_out_p)    # (N, OC2p, S_out_p)

    # -- unpack: drop padding, un-flatten, apply stride, combine complex --
    out = out[:, :OC2, :OH1 * Wp].reshape(N, OC2, OH1, Wp)[:, :, :, :OW1]
    if stride > 1:
        # TODO(synk): native strided kernel instead of subsampling stride-1 output.
        out = out[:, :, ::stride, ::stride]
    return jax.lax.complex(out[:, :OC], out[:, OC:OC2])


# ----------------------------------------------------------------------------
# Pure-JAX references (for correctness check)
# ----------------------------------------------------------------------------
def _ref_conv(x, w, b, stride, padding):
    out = jax.lax.conv_general_dilated(
        x, w, (stride, stride), [(padding, padding)] * 2,
        dimension_numbers=("NCHW", "OIHW", "NCHW"),
        precision=jax.lax.Precision.HIGHEST)
    if b is not None:
        out = out + b[None, :, None, None]
    return out


def _ref_complex_conv2d(xr, xi, wr, wi, br, bi, stride, padding):
    real = _ref_conv(xr, wr, br, stride, padding) - _ref_conv(xi, wi, None, stride, padding)
    imag = _ref_conv(xr, wi, br, stride, padding) + _ref_conv(xi, wr, None, stride, padding)
    return jax.lax.complex(real, imag)


# ----------------------------------------------------------------------------
if __name__ == "__main__":
    key = jax.random.PRNGKey(0)
    k_xr, k_xi, k_wr, k_wi, k_br, k_bi = jax.random.split(key, 6)

    # small shapes: batch=2, in_channels=4, out_channels=8, spatial=16, K=3
    N, Cin, Cout, H, W, K = 2, 4, 8, 16, 16, 3
    stride, padding = 1, 1

    x_real = jax.random.normal(k_xr, (N, Cin, H, W), jnp.float32)
    x_imag = jax.random.normal(k_xi, (N, Cin, H, W), jnp.float32)

    real_weight = jax.random.normal(k_wr, (Cout, Cin, K, K), jnp.float32)
    imag_weight = jax.random.normal(k_wi, (Cout, Cin, K, K), jnp.float32)
    # non-zero real_bias exercises the bias path (and the imag<-real_bias quirk);
    # imag_bias is random to demonstrate it is dead in forward().
    real_bias = 0.1 * jax.random.normal(k_br, (Cout,), jnp.float32)
    imag_bias = jax.random.normal(k_bi, (Cout,), jnp.float32)

    out = complex_conv2d(x_real, x_imag, real_weight, imag_weight,
                         real_bias, imag_bias, stride=stride, padding=padding)
    out = jax.block_until_ready(out)

    assert out.shape == (N, Cout, H, W), out.shape
    assert out.dtype == jnp.complex64, out.dtype

    # (a) Tight check against a reference with identically bf16-quantized
    #     inputs/weights (isolates kernel correctness from the intended
    #     bf16-input / f32-accumulation quantization).
    q = lambda a: a.astype(jnp.bfloat16).astype(jnp.float32)
    ref_q = _ref_complex_conv2d(q(x_real), q(x_imag), q(real_weight),
                                q(imag_weight), real_bias, imag_bias,
                                stride, padding)
    ref_q = jax.block_until_ready(ref_q)
    assert jnp.allclose(out.real, ref_q.real, rtol=5e-3, atol=5e-3)
    assert jnp.allclose(out.imag, ref_q.imag, rtol=5e-3, atol=5e-3)

    # (b) Sanity check against the full-f32 reference; tolerance sized for the
    #     bf16 input quantization (f32 accumulation keeps error small).
    ref = _ref_complex_conv2d(x_real, x_imag, real_weight, imag_weight,
                              real_bias, imag_bias, stride, padding)
    ref = jax.block_until_ready(ref)
    assert jnp.allclose(out.real, ref.real, rtol=2e-2, atol=1e-1)
    assert jnp.allclose(out.imag, ref.imag, rtol=2e-2, atol=1e-1)

    print("KERNEL_OK")
</pallas_src>

<mosaic_0001>
module attributes {stable_mosaic.version = 11 : i64} {
  func.func @_complex_conv_kernel(%arg0: i32, %arg1: i32, %arg2: memref<1x8x512xbf16, #tpu.memory_space<vmem>>, %arg3: memref<9x16x8xbf16, #tpu.memory_space<vmem>>, %arg4: memref<16x1xf32, #tpu.memory_space<vmem>>, %arg5: memref<1x16x384xf32, #tpu.memory_space<vmem>>) attributes {dimension_semantics = [#tpu.dimension_semantics<parallel>, #tpu.dimension_semantics<parallel>], iteration_bounds = array<i64: 2, 1>, scalar_prefetch = 0 : i64, scratch_operands = 0 : i64, tpu.core_type = #tpu.core_type<tc>, window_params = [{transform_indices = @transform_0, window_bounds = array<i64: 1, 8, 512>}, {transform_indices = @transform_1, window_bounds = array<i64: 9, 16, 8>}, {transform_indices = @transform_2, window_bounds = array<i64: 16, 1>}, {transform_indices = @transform_3, window_bounds = array<i64: 1, 16, 384>}]} {
    %cst = arith.constant 0.000000e+00 : f32
    %0 = vector.broadcast %cst : f32 to vector<16x384xf32>
    %c0 = arith.constant 0 : index
    %c0_0 = arith.constant 0 : index
    %c0_1 = arith.constant 0 : index
    %1 = vector.load %arg3[%c0, %c0_0, %c0_1] : memref<9x16x8xbf16, #tpu.memory_space<vmem>>, vector<1x16x8xbf16>
    %2 = vector.shape_cast %1 : vector<1x16x8xbf16> to vector<16x8xbf16>
    %c0_2 = arith.constant 0 : index
    %c0_3 = arith.constant 0 : index
    %c0_4 = arith.constant 0 : index
    %3 = vector.load %arg2[%c0_2, %c0_3, %c0_4] : memref<1x8x512xbf16, #tpu.memory_space<vmem>>, vector<1x8x384xbf16>
    %4 = vector.shape_cast %3 : vector<1x8x384xbf16> to vector<8x384xbf16>
    %cst_5 = arith.constant dense<0.000000e+00> : vector<16x384xf32>
    %5 = tpu.matmul %2, %4, %cst_5 {dimension_numbers = #tpu.dot_dimension_numbers<[1], [0], [0], [1], [0, 0, 1, 1], [], []>} : vector<16x8xbf16>, vector<8x384xbf16>, vector<16x384xf32> -> vector<16x384xf32>
    %6 = arith.addf %0, %5 : vector<16x384xf32>
    %c1 = arith.constant 1 : index
    %c0_6 = arith.constant 0 : index
    %c0_7 = arith.constant 0 : index
    %7 = vector.load %arg3[%c1, %c0_6, %c0_7] : memref<9x16x8xbf16, #tpu.memory_space<vmem>>, vector<1x16x8xbf16>
    %8 = vector.shape_cast %7 : vector<1x16x8xbf16> to vector<16x8xbf16>
    %c0_8 = arith.constant 0 : index
    %c0_9 = arith.constant 0 : index
    %c1_10 = arith.constant 1 : index
    %9 = vector.load %arg2[%c0_8, %c0_9, %c1_10] : memref<1x8x512xbf16, #tpu.memory_space<vmem>>, vector<1x8x384xbf16>
    %10 = vector.shape_cast %9 : vector<1x8x384xbf16> to vector<8x384xbf16>
    %cst_11 = arith.constant dense<0.000000e+00> : vector<16x384xf32>
    %11 = tpu.matmul %8, %10, %cst_11 {dimension_numbers = #tpu.dot_dimension_numbers<[1], [0], [0], [1], [0, 0, 1, 1], [], []>} : vector<16x8xbf16>, vector<8x384xbf16>, vector<16x384xf32> -> vector<16x384xf32>
    %12 = arith.addf %6, %11 : vector<16x384xf32>
    %c2 = arith.constant 2 : index
    %c0_12 = arith.constant 0 : index
    %c0_13 = arith.constant 0 : index
    %13 = vector.load %arg3[%c2, %c0_12, %c0_13] : memref<9x16x8xbf16, #tpu.memory_space<vmem>>, vector<1x16x8xbf16>
    %14 = vector.shape_cast %13 : vector<1x16x8xbf16> to vector<16x8xbf16>
    %c0_14 = arith.constant 0 : index
    %c0_15 = arith.constant 0 : index
    %c2_16 = arith.constant 2 : index
    %15 = vector.load %arg2[%c0_14, %c0_15, %c2_16] : memref<1x8x512xbf16, #tpu.memory_space<vmem>>, vector<1x8x384xbf16>
    %16 = vector.shape_cast %15 : vector<1x8x384xbf16> to vector<8x384xbf16>
    %cst_17 = arith.constant dense<0.000000e+00> : vector<16x384xf32>
    %17 = tpu.matmul %14, %16, %cst_17 {dimension_numbers = #tpu.dot_dimension_numbers<[1], [0], [0], [1], [0, 0, 1, 1], [], []>} : vector<16x8xbf16>, vector<8x384xbf16>, vector<16x384xf32> -> vector<16x384xf32>
    %18 = arith.addf %12, %17 : vector<16x384xf32>
    %c3 = arith.constant 3 : index
    %c0_18 = arith.constant 0 : index
    %c0_19 = arith.constant 0 : index
    %19 = vector.load %arg3[%c3, %c0_18, %c0_19] : memref<9x16x8xbf16, #tpu.memory_space<vmem>>, vector<1x16x8xbf16>
    %20 = vector.shape_cast %19 : vector<1x16x8xbf16> to vector<16x8xbf16>
    %c0_20 = arith.constant 0 : index
    %c0_21 = arith.constant 0 : index
    %c18 = arith.constant 18 : index
    %21 = vector.load %arg2[%c0_20, %c0_21, %c18] : memref<1x8x512xbf16, #tpu.memory_space<vmem>>, vector<1x8x384xbf16>
    %22 = vector.shape_cast %21 : vector<1x8x384xbf16> to vector<8x384xbf16>
    %cst_22 = arith.constant dense<0.000000e+00> : vector<16x384xf32>
    %23 = tpu.matmul %20, %22, %cst_22 {dimension_numbers = #tpu.dot_dimension_numbers<[1], [0], [0], [1], [0, 0, 1, 1], [], []>} : vector<16x8xbf16>, vector<8x384xbf16>, vector<16x384xf32> -> vector<16x384xf32>
    %24 = arith.addf %18, %23 : vector<16x384xf32>
    %c4 = arith.constant 4 : index
    %c0_23 = arith.constant 0 : index
    %c0_24 = arith.constant 0 : index
    %25 = vector.load %arg3[%c4, %c0_23, %c0_24] : memref<9x16x8xbf16, #tpu.memory_space<vmem>>, vector<1x16x8xbf16>
    %26 = vector.shape_cast %25 : vector<1x16x8xbf16> to vector<16x8xbf16>
    %c0_25 = arith.constant 0 : index
    %c0_26 = arith.constant 0 : index
    %c19 = arith.constant 19 : index
    %27 = vector.load %arg2[%c0_25, %c0_26, %c19] : memref<1x8x512xbf16, #tpu.memory_space<vmem>>, vector<1x8x384xbf16>
    %28 = vector.shape_cast %27 : vector<1x8x384xbf16> to vector<8x384xbf16>
    %cst_27 = arith.constant dense<0.000000e+00> : vector<16x384xf32>
    %29 = tpu.matmul %26, %28, %cst_27 {dimension_numbers = #tpu.dot_dimension_numbers<[1], [0], [0], [1], [0, 0, 1, 1], [], []>} : vector<16x8xbf16>, vector<8x384xbf16>, vector<16x384xf32> -> vector<16x384xf32>
    %30 = arith.addf %24, %29 : vector<16x384xf32>
    %c5 = arith.constant 5 : index
    %c0_28 = arith.constant 0 : index
    %c0_29 = arith.constant 0 : index
    %31 = vector.load %arg3[%c5, %c0_28, %c0_29] : memref<9x16x8xbf16, #tpu.memory_space<vmem>>, vector<1x16x8xbf16>
    %32 = vector.shape_cast %31 : vector<1x16x8xbf16> to vector<16x8xbf16>
    %c0_30 = arith.constant 0 : index
    %c0_31 = arith.constant 0 : index
    %c20 = arith.constant 20 : index
    %33 = vector.load %arg2[%c0_30, %c0_31, %c20] : memref<1x8x512xbf16, #tpu.memory_space<vmem>>, vector<1x8x384xbf16>
    %34 = vector.shape_cast %33 : vector<1x8x384xbf16> to vector<8x384xbf16>
    %cst_32 = arith.constant dense<0.000000e+00> : vector<16x384xf32>
    %35 = tpu.matmul %32, %34, %cst_32 {dimension_numbers = #tpu.dot_dimension_numbers<[1], [0], [0], [1], [0, 0, 1, 1], [], []>} : vector<16x8xbf16>, vector<8x384xbf16>, vector<16x384xf32> -> vector<16x384xf32>
    %36 = arith.addf %30, %35 : vector<16x384xf32>
    %c6 = arith.constant 6 : index
    %c0_33 = arith.constant 0 : index
    %c0_34 = arith.constant 0 : index
    %37 = vector.load %arg3[%c6, %c0_33, %c0_34] : memref<9x16x8xbf16, #tpu.memory_space<vmem>>, vector<1x16x8xbf16>
    %38 = vector.shape_cast %37 : vector<1x16x8xbf16> to vector<16x8xbf16>
    %c0_35 = arith.constant 0 : index
    %c0_36 = arith.constant 0 : index
    %c36 = arith.constant 36 : index
    %39 = vector.load %arg2[%c0_35, %c0_36, %c36] : memref<1x8x512xbf16, #tpu.memory_space<vmem>>, vector<1x8x384xbf16>
    %40 = vector.shape_cast %39 : vector<1x8x384xbf16> to vector<8x384xbf16>
    %cst_37 = arith.constant dense<0.000000e+00> : vector<16x384xf32>
    %41 = tpu.matmul %38, %40, %cst_37 {dimension_numbers = #tpu.dot_dimension_numbers<[1], [0], [0], [1], [0, 0, 1, 1], [], []>} : vector<16x8xbf16>, vector<8x384xbf16>, vector<16x384xf32> -> vector<16x384xf32>
    %42 = arith.addf %36, %41 : vector<16x384xf32>
    %c7 = arith.constant 7 : index
    %c0_38 = arith.constant 0 : index
    %c0_39 = arith.constant 0 : index
    %43 = vector.load %arg3[%c7, %c0_38, %c0_39] : memref<9x16x8xbf16, #tpu.memory_space<vmem>>, vector<1x16x8xbf16>
    %44 = vector.shape_cast %43 : vector<1x16x8xbf16> to vector<16x8xbf16>
    %c0_40 = arith.constant 0 : index
    %c0_41 = arith.constant 0 : index
    %c37 = arith.constant 37 : index
    %45 = vector.load %arg2[%c0_40, %c0_41, %c37] : memref<1x8x512xbf16, #tpu.memory_space<vmem>>, vector<1x8x384xbf16>
    %46 = vector.shape_cast %45 : vector<1x8x384xbf16> to vector<8x384xbf16>
    %cst_42 = arith.constant dense<0.000000e+00> : vector<16x384xf32>
    %47 = tpu.matmul %44, %46, %cst_42 {dimension_numbers = #tpu.dot_dimension_numbers<[1], [0], [0], [1], [0, 0, 1, 1], [], []>} : vector<16x8xbf16>, vector<8x384xbf16>, vector<16x384xf32> -> vector<16x384xf32>
    %48 = arith.addf %42, %47 : vector<16x384xf32>
    %c8 = arith.constant 8 : index
    %c0_43 = arith.constant 0 : index
    %c0_44 = arith.constant 0 : index
    %49 = vector.load %arg3[%c8, %c0_43, %c0_44] : memref<9x16x8xbf16, #tpu.memory_space<vmem>>, vector<1x16x8xbf16>
    %50 = vector.shape_cast %49 : vector<1x16x8xbf16> to vector<16x8xbf16>
    %c0_45 = arith.constant 0 : index
    %c0_46 = arith.constant 0 : index
    %c38 = arith.constant 38 : index
    %51 = vector.load %arg2[%c0_45, %c0_46, %c38] : memref<1x8x512xbf16, #tpu.memory_space<vmem>>, vector<1x8x384xbf16>
    %52 = vector.shape_cast %51 : vector<1x8x384xbf16> to vector<8x384xbf16>
    %cst_47 = arith.constant dense<0.000000e+00> : vector<16x384xf32>
    %53 = tpu.matmul %50, %52, %cst_47 {dimension_numbers = #tpu.dot_dimension_numbers<[1], [0], [0], [1], [0, 0, 1, 1], [], []>} : vector<16x8xbf16>, vector<8x384xbf16>, vector<16x384xf32> -> vector<16x384xf32>
    %54 = arith.addf %48, %53 : vector<16x384xf32>
    %c0_48 = arith.constant 0 : index
    %c0_49 = arith.constant 0 : index
    %55 = vector.load %arg4[%c0_48, %c0_49] : memref<16x1xf32, #tpu.memory_space<vmem>>, vector<16x1xf32>
    %56 = vector.broadcast %55 : vector<16x1xf32> to vector<16x384xf32>
    %57 = arith.addf %54, %56 : vector<16x384xf32>
    %c0_50 = arith.constant 0 : index
    %c0_51 = arith.constant 0 : index
    %c0_52 = arith.constant 0 : index
    %58 = vector.load %arg5[%c0_50, %c0_51, %c0_52] : memref<1x16x384xf32, #tpu.memory_space<vmem>>, vector<1x16x384xf32>
    %59 = vector.shape_cast %58 : vector<1x16x384xf32> to vector<16x384xf32>
    %60 = vector.shape_cast %57 : vector<16x384xf32> to vector<1x16x384xf32>
    tpu.vector_store %arg5[%c0_50, %c0_51, %c0_52], %60 {strides = array<i32>} : memref<1x16x384xf32, #tpu.memory_space<vmem>>, vector<1x16x384xf32>,
    return
  }
  func.func @transform_0(%arg0: i32, %arg1: i32) -> (i32, i32, i32) {
    %c0_i32 = arith.constant 0 : i32
    %c0_i32_0 = arith.constant 0 : i32
    %c0_i32_1 = arith.constant 0 : i32
    return %arg0, %c0_i32, %c0_i32_0 : i32, i32, i32
  }
  func.func @transform_1(%arg0: i32, %arg1: i32) -> (i32, i32, i32) {
    %c0_i32 = arith.constant 0 : i32
    %c0_i32_0 = arith.constant 0 : i32
    %c0_i32_1 = arith.constant 0 : i32
    return %c0_i32, %arg1, %c0_i32_0 : i32, i32, i32
  }
  func.func @transform_2(%arg0: i32, %arg1: i32) -> (i32, i32) {
    %c0_i32 = arith.constant 0 : i32
    %c0_i32_0 = arith.constant 0 : i32
    return %arg1, %c0_i32 : i32, i32
  }
  func.func @transform_3(%arg0: i32, %arg1: i32) -> (i32, i32, i32) {
    %c0_i32 = arith.constant 0 : i32
    %c0_i32_0 = arith.constant 0 : i32
    return %arg0, %arg1, %c0_i32 : i32, i32, i32
  }
}

</mosaic_0001>

<bundles_post_ra>
// kernel: custom-call
= control target key start
LH: loop header
LB: loop body
LE: loop exit
PB: predicated region body
PF: predicated region fallthrough
CT: control target
= control target key end

     0   :  { %s92_s0 = inlined_call_operand.vmem [shape: f32[2,8,16,16], index: 0, kind: input, shape index: {}]   ;;  %s93_s1 = inlined_call_operand.vmem [shape: f32[2,8,16,16], index: 1, kind: input, shape index: {}]   ;;  %s94_s2 = inlined_call_operand.hbm [shape: c64[2,8,16,16], index: 2, kind: output, shape index: {}]  }
   0x1   :  { %s3_s11 = scalar_lea.hbm %s94_s2, 4096 }
   0x2   :  { %4 = vsyncpa [#allocation0], 0  ;;  %s5_s14 = sshll.u32 %s92_s0, 4  ;;  %s6_s14 = int_to_ptr.vmem [resolvable:$true] %s5_s14 }
   0x3   :  { %s18_s15 = scalar_lea.vmem %s6_s14, 4096  ;;  %p23_p1 = scmp.lt.s32.totalorder %s6_s14, %s6_s14 }
   0x4   :  { %p19_p0 = scmp.ne.s32.totalorder %s6_s14, %s18_s15  ;;  %p24_p2 = scmp.lt.s32.totalorder %s18_s15, %s18_s15 }
   0x6   :  { %p25_p3 = por %p24_p2, %p23_p1 }
   0x8   :  { %p26_p4 = pnand %p25_p3, %p19_p0 }
   0xa   :  { %29 = shalt.err (!%p26_p4)  }
   0xb   :  { %8 = dma.vmem_to_hbm [thread:$0]  %s6_s14, 4096, %s94_s2, [#allocation0] }
   0xc   :  { %61 = dma.done.wait [#allocation0], 4096  }
   0xd   :  { %62 = vsyncadd [#allocation0], 4294963200 }
   0xe   :  { %10 = vsyncpa [#allocation0], 1 }
   0xf   :  { %11 = vsyncpa [#allocation1], 0  ;;  %s12_s0 = sshll.u32 %s93_s1, 4  ;;  %s13_s0 = int_to_ptr.vmem [resolvable:$true] %s12_s0 }
  0x10   :  { %s38_s20 = scalar_lea.vmem %s13_s0, 4096  ;;  %p43_p6 = scmp.lt.s32.totalorder %s13_s0, %s13_s0 }
  0x11   :  { %p39_p5 = scmp.ne.s32.totalorder %s13_s0, %s38_s20  ;;  %p44_p7 = scmp.lt.s32.totalorder %s38_s20, %s38_s20 }
  0x13   :  { %p45_p8 = por %p44_p7, %p43_p6 }
  0x15   :  { %p46_p9 = pnand %p45_p8, %p39_p5 }
  0x17   :  { %49 = shalt.err (!%p46_p9)  }
  0x18   :  { %15 = dma.vmem_to_hbm [thread:$0]  %s13_s0, 4096, %s3_s11, [#allocation1] }
  0x19   :  { %63 = dma.done.wait [#allocation1], 4096  }
  0x1a   :  { %64 = vsyncadd [#allocation1], 4294963200 }
  0x1b   :  { %17 = vsyncpa [#allocation1], 1 }

// kernel: complex_conv2d.1
= control target key start
LH: loop header
LB: loop body
LE: loop exit
PB: predicated region body
PF: predicated region fallthrough
CT: control target
= control target key end

     0   :  { %s1730_s12 = smov 0   ;;  %s1732_s13 = smov 0   ;;  %s1899_s0 = inlined_call_operand.vmem [shape: bf16[2,8,512], index: 0, kind: input, shape index: {}]   ;;  %s1900_s1 = inlined_call_operand.vmem [shape: bf16[9,16,8], index: 1, kind: input, shape index: {}]   ;;  %s1901_s2 = inlined_call_operand.vmem [shape: f32[16,1], index: 2, kind: input, shape index: {}]   ;;  %s1902_s3 = inlined_call_operand.vmem [shape: f32[2,16,384], index: 3, kind: output, shape index: {}]  }
   0x1   :  { %s1734_s14 = smov 0  }
   0x2 LB: > { %s25_s15 = sadd.s32 1, %s1693_s13  ;;  %p1485_p0 = scmp.ge.s32.totalorder %s1697_s14, 1  ;;  %s1697_s14 = sphi %s1734_s14, %s13_s14   ;;  %s1693_s13 = sphi %s1732_s13, %s1904_s13   ;;  %s1689_s12 = sphi %s1730_s12, %s1903_s12  }
   0x3   : > { %p27_p1 = scmp.ge.s32.totalorder %s25_s15, 2  ;;  %p173_p2 = scmp.lt.s32.totalorder %s1697_s14, 3 }
   0x5   : > { %s1906_s15 = smov (%p27_p1, %s25_s15), 0  ;;  %p174_p3 = pnand %p1485_p0, %p173_p2 }
   0x6   : > { %p212_p4 = scmp.lt.s32.totalorder (!%p174_p3), %s1689_s12, 1  ;;  %s1702_s20 = smov (!%p174_p3), 127  }
   0x7   : > { %177 = sbr.rel (%p174_p3) target bundleno = 410 (0x19a), region = 32  ;;  %s1703_s21 = smov (!%p174_p3), 126  }
   0x8   : > { %s1704_s22 = smov (!%p174_p3), 110   ;;  %s1705_s23 = smov (!%p174_p3), 109  }
   0x9   : > { %s1706_s24 = smov (!%p174_p3), 108   ;;  %s1707_s25 = smov (!%p174_p3), 92  }
   0xa   : > { %s1708_s26 = smov (!%p174_p3), 91   ;;  %s1709_s27 = smov (!%p174_p3), 90  }
   0xc   : > { %v1699_v0 = vmov 0.0   ;;  %s1908_s12 = smov (!%p212_p4, %s1689_s12), 1  ;;  %v1700_v1 = vmov 0   ;;  %vm1701_vm0 = vmmov 0   ;;  %v1338_v8 = vld [vmem:[%s1901_s2] sm:$0xff]  ;;  %v1339_v9 = vld [vmem:[%s1901_s2 + $0x8] sm:$0xff] }
   0xd   : > { %1569 = vmatprep.subr.bf16.mxu1 %v1699_v0  ;;  %323 = vmatprep.mubr.bf16.mxu0 %v1700_v1  ;;  %s1550_s16 = sshll.u32 %s1908_s12, 4  ;;  %vm273_vm1 = vcmask 1039360   ;;  %vm281_vm2 = vcmask 1043456   ;;  %v1665_v20 = vld [vmem:[%s1900_s1 + $0x8] sm:$0xff]   ;;  %vm277_vm3 = vcmask 64512   ;;  %vm500_vm4 = vcmask 1031168  }
   0xe   : > { %1571 = vmatprep.mubr.msk.bf16.mxu1 %vm1701_vm0, %v1699_v0  ;;  %1659 = vset.pattern.permute.xlu0 %v1700_v1  ;;  %s1760_s19 = scalar_lea.vmem %s1899_s0, %s1550_s16  ;;  %v1667_v30 = vld [vmem:[%s1900_s1] sm:$0xff]   ;;  %vm622_vm5 = vcmask 900096   ;;  %v1668_v40 = vld [vmem:[%s1900_s1 + $0x10] sm:$0xff]   ;;  %vm744_vm6 = vcmask 891904   ;;  %v1669_v50 = vld [vmem:[%s1900_s1 + $0x18] sm:$0xff]   ;;  %vm866_vm7 = vcmask 883712  }
   0xf   : > { %1660 = vset.pattern.permute.xlu1 %v1700_v1  ;;  %v249_v2 = vld [vmem:[%s1760_s19 + $0x8] sm:$0xff]  ;;  %v248_v3 = vld [vmem:[%s1760_s19] sm:$0xff]  ;;  %vm988_vm8 = vcmask 752640   ;;  %vm1110_vm9 = vcmask 744448   ;;  %vm1232_vm10 = vcmask 736256  }
  0x10   : > { %v1494_v4 = vcombine.low %v249_v2, %v249_v2  ;;  %v1764_v5 = vcombine.low %v248_v3, %v248_v3  ;;  %v1495_v6 = vcombine.high %v249_v2, %v249_v2  ;;  %v1493_v7 = vcombine.high %v248_v3, %v248_v3  ;;  %v1666_v14 = vld [vmem:[%s1760_s19 + $0x8] ss:$0 sps:$4 sm:$0xff]   ;;  %v1670_v60 = vld [vmem:[%s1900_s1 + $0x20] sm:$0xff]  }
  0x11   : > { %v398_v24 = vsel %vm281_vm2, %v1666_v14, 0 }
  0x12   : > { %269 = vrot.lane.b32.xlu1 %v1494_v4, %s1702_s20  ;;  %265 = vrot.lane.b32.xlu0 %v1764_v5, %s1702_s20  ;;  %v392_v22 = vsel %vm281_vm2, %v1764_v5, 0 }
  0x16   : > { %271 = vrot.lane.b32.xlu1 %v1495_v6, %s1702_s20  ;;  %267 = vrot.lane.b32.xlu0 %v1493_v7, %s1702_s20 }
  0x1a   : > { %492 = vrot.lane.b32.xlu0 %v1764_v5, %s1703_s21  ;;  %494 = vrot.lane.b32.xlu1 %v1493_v7, %s1703_s21 }
  0x1e   : > { %496 = vrot.lane.b32.xlu0 %v1494_v4, %s1703_s21  ;;  %498 = vrot.lane.b32.xlu1 %v1495_v6, %s1703_s21 }
  0x22   : > { %614 = vrot.lane.b32.xlu0 %v1764_v5, %s1704_s22  ;;  %616 = vrot.lane.b32.xlu1 %v1493_v7, %s1704_s22 }
  0x26   : > { %618 = vrot.lane.b32.xlu0 %v1494_v4, %s1704_s22  ;;  %620 = vrot.lane.b32.xlu1 %v1495_v6, %s1704_s22 }
  0x2a   : > { %736 = vrot.lane.b32.xlu0 %v1764_v5, %s1705_s23  ;;  %738 = vrot.lane.b32.xlu1 %v1493_v7, %s1705_s23 }
  0x2e   : > { %740 = vrot.lane.b32.xlu0 %v1494_v4, %s1705_s23  ;;  %742 = vrot.lane.b32.xlu1 %v1495_v6, %s1705_s23 }
  0x32   : > { %858 = vrot.lane.b32.xlu0 %v1764_v5, %s1706_s24  ;;  %860 = vrot.lane.b32.xlu1 %v1493_v7, %s1706_s24 }
  0x36   : > { %862 = vrot.lane.b32.xlu0 %v1494_v4, %s1706_s24  ;;  %864 = vrot.lane.b32.xlu1 %v1495_v6, %s1706_s24 }
  0x3a   : > { %980 = vrot.lane.b32.xlu0 %v1764_v5, %s1707_s25  ;;  %982 = vrot.lane.b32.xlu1 %v1493_v7, %s1707_s25 }
  0x3e   : > { %984 = vrot.lane.b32.xlu0 %v1494_v4, %s1707_s25  ;;  %986 = vrot.lane.b32.xlu1 %v1495_v6, %s1707_s25 }
  0x42   : > { %1102 = vrot.lane.b32.xlu0 %v1764_v5, %s1708_s26  ;;  %1104 = vrot.lane.b32.xlu1 %v1493_v7, %s1708_s26 }
  0x46   : > { %1106 = vrot.lane.b32.xlu0 %v1494_v4, %s1708_s26  ;;  %1108 = vrot.lane.b32.xlu1 %v1495_v6, %s1708_s26 }
  0x4a   : > { %1224 = vrot.lane.b32.xlu0 %v1764_v5, %s1709_s27  ;;  %1226 = vrot.lane.b32.xlu1 %v1493_v7, %s1709_s27 }
  0x4e   : > { %1228 = vrot.lane.b32.xlu0 %v1494_v4, %s1709_s27  ;;  %1230 = vrot.lane.b32.xlu1 %v1495_v6, %s1709_s27  ;;  %s1623_s27 = smul.u32 48, %s1908_s12 }
  0x50   : > { %s238_s30 = scalar_lea.vmem %s1902_s3, %s1623_s27 }
  0x52   : > { %1342 = vperm.xlu0 %1659, %v1338_v8   ;;  %1347 = vperm.xlu1 %1660, %v1339_v9   ;;  %v1671_v8 = vld [vmem:[%s1900_s1 + $0x28] sm:$0xff]  }
  0x84   : > { %v270_v10 = vpop.permute.xlu1 %269  ;;  %v266_v11 = vpop.permute.xlu0 %265 }
  0x88   : > { %v272_v12 = vpop.permute.xlu1 %271  ;;  %v268_v13 = vpop.permute.xlu0 %267 }
  0x89   : > { %v275_v15 = vsel %vm273_vm1, %v268_v13, %v270_v10  ;;  %v274_v16 = vsel %vm273_vm1, %v266_v11, %v268_v13  ;;  %v276_v17 = vsel %vm273_vm1, %v270_v10, %v272_v12 }
  0x8a   : > { %1496 = vmatprep.subr.msk.bf16.mxu0 %vm281_vm2, %v275_v15  ;;  %v283_v18 = vsel %vm281_vm2, %v274_v16, 0  ;;  %v289_v19 = vsel %vm281_vm2, %v276_v17, 0 }
  0x8b   : > { %306 = vmatpush1.bf16.msra.mxu0 %v283_v18  ;;  %1570 = vmatpush3.bf16.msra.mxu1 %v289_v19  ;;  %v1672_v18 = vld [vmem:[%s1900_s1 + $0x30] sm:$0xff]  }
  0x8c   : > { %v493_v21 = vpop.permute.xlu0 %492  ;;  %1503 = vmatprep.subr.msk.bf16.mxu0 %vm281_vm2, %v1493_v7  ;;  %1575 = vmatprep.subr.bf16.mxu1 %v1699_v0  ;;  %v495_v23 = vpop.permute.xlu1 %494 }
  0x8d   : > { %v501_v27 = vsel %vm500_vm4, %v493_v21, %v495_v23 }
  0x8e   : > { %1497 = vmatmul.mubr.msk.bf16.vlgmr.msra.gmra.mxu0 %vm277_vm3, %v1665_v20  ;;  %1572 = vmatmul.mubr.msk.bf16.vlgmr.msra.gmra.mxu1 %vm277_vm3, %v1665_v20  ;;  %v508_v31 = vsel %vm281_vm2, %v501_v27, 0 }
  0x8f   : > { %415 = vmatpush1.bf16.msra.mxu0 %v392_v22  ;;  %1576 = vmatpush3.bf16.msra.mxu1 %v398_v24 }
  0x90   : > { %v497_v25 = vpop.permute.xlu0 %496  ;;  %v499_v26 = vpop.permute.xlu1 %498  ;;  %432 = vmatprep.mubr.bf16.mxu0 %v1700_v1  ;;  %1577 = vmatprep.mubr.msk.bf16.mxu1 %vm1701_vm0, %v1699_v0 }
  0x91   : > { %v502_v28 = vsel %vm500_vm4, %v495_v23, %v497_v25  ;;  %v503_v29 = vsel %vm500_vm4, %v497_v25, %v499_v26  ;;  %1581 = vmatprep.subr.bf16.mxu1 %v1699_v0 }
  0x92   : > { %1509 = vmatprep.subr.msk.bf16.mxu0 %vm281_vm2, %v502_v28  ;;  %v514_v32 = vsel %vm281_vm2, %v503_v29, 0  ;;  %v1673_v28 = vld [vmem:[%s1900_s1 + $0x38] sm:$0xff]  }
  0x94   : > { %v615_v33 = vpop.permute.xlu0 %614  ;;  %v617_v34 = vpop.permute.xlu1 %616 }
  0x95   : > { %v623_v37 = vsel %vm622_vm5, %v615_v33, %v617_v34 }
  0x96   : > { %1504 = vmatmul.mubr.msk.bf16.vlgmr.msra.gmra.mxu0 %vm277_vm3, %v1667_v30  ;;  %1578 = vmatmul.mubr.msk.bf16.vlgmr.msra.gmra.mxu1 %vm277_vm3, %v1667_v30  ;;  %v630_v41 = vsel %vm281_vm2, %v623_v37, 0 }
  0x97   : > { %531 = vmatpush1.bf16.msra.mxu0 %v508_v31  ;;  %1582 = vmatpush3.bf16.msra.mxu1 %v514_v32  ;;  %v1674_v31 = vld [vmem:[%s1900_s1 + $0x40] sm:$0xff]  }
  0x98   : > { %v619_v35 = vpop.permute.xlu0 %618  ;;  %v621_v36 = vpop.permute.xlu1 %620  ;;  %548 = vmatprep.mubr.bf16.mxu0 %v1700_v1  ;;  %1583 = vmatprep.mubr.msk.bf16.mxu1 %vm1701_vm0, %v1699_v0 }
  0x99   : > { %v624_v38 = vsel %vm622_vm5, %v617_v34, %v619_v35  ;;  %v625_v39 = vsel %vm622_vm5, %v619_v35, %v621_v36  ;;  %1587 = vmatprep.subr.bf16.mxu1 %v1699_v0 }
  0x9a   : > { %1515 = vmatprep.subr.msk.bf16.mxu0 %vm281_vm2, %v624_v38  ;;  %v636_v42 = vsel %vm281_vm2, %v625_v39, 0 }
  0x9c   : > { %v737_v43 = vpop.permute.xlu0 %736  ;;  %v739_v44 = vpop.permute.xlu1 %738 }
  0x9d   : > { %v745_v47 = vsel %vm744_vm6, %v737_v43, %v739_v44 }
  0x9e   : > { %1510 = vmatmul.mubr.msk.bf16.vlgmr.msra.gmra.mxu0 %vm277_vm3, %v1668_v40  ;;  %1584 = vmatmul.mubr.msk.bf16.vlgmr.msra.gmra.mxu1 %vm277_vm3, %v1668_v40  ;;  %v752_v51 = vsel %vm281_vm2, %v745_v47, 0 }
  0x9f   : > { %653 = vmatpush1.bf16.msra.mxu0 %v630_v41  ;;  %1588 = vmatpush3.bf16.msra.mxu1 %v636_v42 }
  0xa0   : > { %v741_v45 = vpop.permute.xlu0 %740  ;;  %v743_v46 = vpop.permute.xlu1 %742  ;;  %670 = vmatprep.mubr.bf16.mxu0 %v1700_v1  ;;  %1589 = vmatprep.mubr.msk.bf16.mxu1 %vm1701_vm0, %v1699_v0 }
  0xa1   : > { %v746_v48 = vsel %vm744_vm6, %v739_v44, %v741_v45  ;;  %v747_v49 = vsel %vm744_vm6, %v741_v45, %v743_v46  ;;  %1593 = vmatprep.subr.bf16.mxu1 %v1699_v0 }
  0xa2   : > { %1521 = vmatprep.subr.msk.bf16.mxu0 %vm281_vm2, %v746_v48  ;;  %v758_v52 = vsel %vm281_vm2, %v747_v49, 0 }
  0xa4   : > { %v859_v53 = vpop.permute.xlu0 %858  ;;  %v861_v54 = vpop.permute.xlu1 %860 }
  0xa5   : > { %v867_v57 = vsel %vm866_vm7, %v859_v53, %v861_v54 }
  0xa6   : > { %1516 = vmatmul.mubr.msk.bf16.vlgmr.msra.gmra.mxu0 %vm277_vm3, %v1669_v50  ;;  %1590 = vmatmul.mubr.msk.bf16.vlgmr.msra.gmra.mxu1 %vm277_vm3, %v1669_v50  ;;  %v874_v61 = vsel %vm281_vm2, %v867_v57, 0 }
  0xa7   : > { %775 = vmatpush1.bf16.msra.mxu0 %v752_v51  ;;  %1594 = vmatpush3.bf16.msra.mxu1 %v758_v52 }
  0xa8   : > { %v863_v55 = vpop.permute.xlu0 %862  ;;  %v865_v56 = vpop.permute.xlu1 %864  ;;  %792 = vmatprep.mubr.bf16.mxu0 %v1700_v1  ;;  %1595 = vmatprep.mubr.msk.bf16.mxu1 %vm1701_vm0, %v1699_v0 }
  0xa9   : > { %v868_v58 = vsel %vm866_vm7, %v861_v54, %v863_v55  ;;  %v869_v59 = vsel %vm866_vm7, %v863_v55, %v865_v56  ;;  %1599 = vmatprep.subr.bf16.mxu1 %v1699_v0 }
  0xaa   : > { %1527 = vmatprep.subr.msk.bf16.mxu0 %vm281_vm2, %v868_v58  ;;  %v880_v62 = vsel %vm281_vm2, %v869_v59, 0 }
  0xac   : > { %v981_v63 = vpop.permute.xlu0 %980  ;;  %v983_v2 = vpop.permute.xlu1 %982 }
  0xad   : > { %v989_v5 = vsel %vm988_vm8, %v981_v63, %v983_v2 }
  0xae   : > { %1522 = vmatmul.mubr.msk.bf16.vlgmr.msra.gmra.mxu0 %vm277_vm3, %v1670_v60  ;;  %1596 = vmatmul.mubr.msk.bf16.vlgmr.msra.gmra.mxu1 %vm277_vm3, %v1670_v60  ;;  %v996_v9 = vsel %vm281_vm2, %v989_v5, 0 }
  0xaf   : > { %897 = vmatpush1.bf16.msra.mxu0 %v874_v61  ;;  %1600 = vmatpush3.bf16.msra.mxu1 %v880_v62 }
  0xb0   : > { %v985_v3 = vpop.permute.xlu0 %984  ;;  %v987_v4 = vpop.permute.xlu1 %986  ;;  %914 = vmatprep.mubr.bf16.mxu0 %v1700_v1  ;;  %1601 = vmatprep.mubr.msk.bf16.mxu1 %vm1701_vm0, %v1699_v0 }
  0xb1   : > { %v990_v6 = vsel %vm988_vm8, %v983_v2, %v985_v3  ;;  %v991_v7 = vsel %vm988_vm8, %v985_v3, %v987_v4  ;;  %1605 = vmatprep.subr.bf16.mxu1 %v1699_v0 }
  0xb2   : > { %1533 = vmatprep.subr.msk.bf16.mxu0 %vm281_vm2, %v990_v6  ;;  %v1002_v10 = vsel %vm281_vm2, %v991_v7, 0 }
  0xb4   : > { %v1103_v11 = vpop.permute.xlu0 %1102  ;;  %v1105_v12 = vpop.permute.xlu1 %1104 }
  0xb5   : > { %v1111_v15 = vsel %vm1110_vm9, %v1103_v11, %v1105_v12 }
  0xb6   : > { %1528 = vmatmul.mubr.msk.bf16.vlgmr.msra.gmra.mxu0 %vm277_vm3, %v1671_v8  ;;  %1602 = vmatmul.mubr.msk.bf16.vlgmr.msra.gmra.mxu1 %vm277_vm3, %v1671_v8  ;;  %v1118_v19 = vsel %vm281_vm2, %v1111_v15, 0 }
  0xb7   : > { %1019 = vmatpush1.bf16.msra.mxu0 %v996_v9  ;;  %1606 = vmatpush3.bf16.msra.mxu1 %v1002_v10 }
  0xb8   : > { %v1107_v13 = vpop.permute.xlu0 %1106  ;;  %v1109_v14 = vpop.permute.xlu1 %1108  ;;  %1036 = vmatprep.mubr.bf16.mxu0 %v1700_v1  ;;  %1607 = vmatprep.mubr.msk.bf16.mxu1 %vm1701_vm0, %v1699_v0 }
  0xb9   : > { %v1112_v16 = vsel %vm1110_vm9, %v1105_v12, %v1107_v13  ;;  %v1113_v17 = vsel %vm1110_vm9, %v1107_v13, %v1109_v14  ;;  %1611 = vmatprep.subr.bf16.mxu1 %v1699_v0 }
  0xba   : > { %1539 = vmatprep.subr.msk.bf16.mxu0 %vm281_vm2, %v1112_v16  ;;  %v1124_v20 = vsel %vm281_vm2, %v1113_v17, 0 }
  0xbc   : > { %v1225_v21 = vpop.permute.xlu0 %1224  ;;  %v1227_v22 = vpop.permute.xlu1 %1226 }
  0xbd   : > { %v1233_v25 = vsel %vm1232_vm10, %v1225_v21, %v1227_v22 }
  0xbe   : > { %1534 = vmatmul.mubr.msk.bf16.vlgmr.msra.gmra.mxu0 %vm277_vm3, %v1672_v18  ;;  %1608 = vmatmul.mubr.msk.bf16.vlgmr.msra.gmra.mxu1 %vm277_vm3, %v1672_v18  ;;  %v1240_v29 = vsel %vm281_vm2, %v1233_v25, 0 }
  0xbf   : > { %1141 = vmatpush1.bf16.msra.mxu0 %v1118_v19  ;;  %1612 = vmatpush3.bf16.msra.mxu1 %v1124_v20 }
  0xc0   : > { %v1229_v23 = vpop.permute.xlu0 %1228  ;;  %v1231_v24 = vpop.permute.xlu1 %1230  ;;  %1158 = vmatprep.mubr.bf16.mxu0 %v1700_v1  ;;  %1613 = vmatprep.mubr.msk.bf16.mxu1 %vm1701_vm0, %v1699_v0 }
  0xc1   : > { %v1234_v26 = vsel %vm1232_vm10, %v1227_v22, %v1229_v23  ;;  %v1235_v27 = vsel %vm1232_vm10, %v1229_v23, %v1231_v24  ;;  %1617 = vmatprep.subr.bf16.mxu1 %v1699_v0 }
  0xc2   : > { %1545 = vmatprep.subr.msk.bf16.mxu0 %vm281_vm2, %v1234_v26  ;;  %v1246_v30 = vsel %vm281_vm2, %v1235_v27, 0 }
  0xc6   : > { %1540 = vmatmul.mubr.msk.bf16.vlgmr.msra.gmra.mxu0 %vm277_vm3, %v1673_v28  ;;  %1614 = vmatmul.mubr.msk.bf16.vlgmr.msra.gmra.mxu1 %vm277_vm3, %v1673_v28 }
  0xc7   : > { %1263 = vmatpush1.bf16.msra.mxu0 %v1240_v29  ;;  %1618 = vmatpush3.bf16.msra.mxu1 %v1246_v30 }
  0xc8   : > { %1280 = vmatprep.mubr.bf16.mxu0 %v1700_v1  ;;  %1619 = vmatprep.mubr.msk.bf16.mxu1 %vm1701_vm0, %v1699_v0 }
  0xce   : > { %1546 = vmatmul.mubr.msk.bf16.vlgmr.msra.gmra.mxu0 %vm277_vm3, %v1674_v31  ;;  %1620 = vmatmul.mubr.msk.bf16.vlgmr.msra.gmra.mxu1 %vm277_vm3, %v1674_v31 }
 0x14e   : > { %v325_v32 = vpop.f32.mrf.mxu0  ;;  %v368_v33 = vpop.f32.mrf.mxu1 }
 0x150   : > { %v327_v34 = vpop.f32.mrf.mxu0  ;;  %v1573_v35 = vpop.f32.mrf.mxu1 }
 0x152   : > { %v329_v36 = vpop.f32.mrf.mxu0  ;;  %v371_v37 = vpop.f32.mrf.mxu1 }
 0x154   : > { %v331_v38 = vpop.f32.mrf.mxu0  ;;  %v1574_v39 = vpop.f32.mrf.mxu1 }
 0x156   : > { %v434_v1 = vpop.f32.mrf.mxu0  ;;  %v477_v40 = vpop.f32.mrf.mxu1 }
 0x157   : > { %v435_v20 = vadd.f32 %v434_v1, %v325_v32  ;;  %v478_v21 = vadd.f32 %v477_v40, %v368_v33 }
 0x158   : > { %v436_v41 = vpop.f32.mrf.mxu0  ;;  %v1579_v0 = vpop.f32.mrf.mxu1 }
 0x159   : > { %v437_v24 = vadd.f32 %v436_v41, %v327_v34 }
 0x15a   : > { %v438_v42 = vpop.f32.mrf.mxu0  ;;  %v480_v43 = vpop.f32.mrf.mxu1 }
 0x15b   : > { %v439_v27 = vadd.f32 %v438_v42, %v329_v36  ;;  %v481_v30 = vadd.f32 %v480_v43, %v371_v37 }
 0x15c   : > { %v440_v44 = vpop.f32.mrf.mxu0  ;;  %v1580_v45 = vpop.f32.mrf.mxu1 }
 0x15d   : > { %v441_v0 = vadd.f32 %v440_v44, %v331_v38 }
 0x15e   : > { %v550_v46 = vpop.f32.mrf.mxu0  ;;  %v593_v47 = vpop.f32.mrf.mxu1 }
 0x15f   : > { %v600_v25 = vadd.f32 %v550_v46, %v435_v20  ;;  %v602_v26 = vadd.f32 %v593_v47, %v478_v21 }
 0x160   : > { %v552_v48 = vpop.f32.mrf.mxu0  ;;  %v1585_v49 = vpop.f32.mrf.mxu1 }
 0x161   : > { %v601_v31 = vadd.f32 %v552_v48, %v437_v24 }
 0x162   : > { %v554_v50 = vpop.f32.mrf.mxu0  ;;  %v596_v51 = vpop.f32.mrf.mxu1 }
 0x163   : > { %v603_v45 = vadd.f32 %v554_v50, %v439_v27 }
 0x164   : > { %v556_v52 = vpop.f32.mrf.mxu0  ;;  %v1586_v53 = vpop.f32.mrf.mxu1 }
 0x165   : > { %v604_v1 = vadd.f32 %v556_v52, %v441_v0 }
 0x166   : > { %v672_v54 = vpop.f32.mrf.mxu0  ;;  %v715_v55 = vpop.f32.mrf.mxu1 }
 0x167   : > { %v722_v35 = vadd.f32 %v672_v54, %v600_v25  ;;  %v724_v39 = vadd.f32 %v715_v55, %v602_v26 }
 0x168   : > { %v674_v56 = vpop.f32.mrf.mxu0  ;;  %v1591_v57 = vpop.f32.mrf.mxu1 }
 0x169   : > { %v605_v57 = vadd.f32 %v596_v51, %v481_v30 }
 0x16a   : > { %v676_v58 = vpop.f32.mrf.mxu0  ;;  %v718_v59 = vpop.f32.mrf.mxu1 }
 0x16b   : > { %v725_v40 = vadd.f32 %v676_v58, %v603_v45  ;;  %v727_v46 = vadd.f32 %v718_v59, %v605_v57 }
 0x16c   : > { %v678_v60 = vpop.f32.mrf.mxu0  ;;  %v1592_v61 = vpop.f32.mrf.mxu1 }
 0x16d   : > { %v723_v61 = vadd.f32 %v674_v56, %v601_v31  ;;  %v726_v43 = vadd.f32 %v678_v60, %v604_v1 }
 0x16e   : > { %v794_v62 = vpop.f32.mrf.mxu0  ;;  %v837_v63 = vpop.f32.mrf.mxu1 }
 0x16f   : > { %v844_v32 = vadd.f32 %v794_v62, %v722_v35  ;;  %v846_v33 = vadd.f32 %v837_v63, %v724_v39 }
 0x170   : > { %v796_v2 = vpop.f32.mrf.mxu0  ;;  %v1597_v3 = vpop.f32.mrf.mxu1 }
 0x171   : > { %v845_v36 = vadd.f32 %v796_v2, %v723_v61  ;;  %v1343_v2 = vpop.permute.xlu0 %1342 }
 0x172   : > { %v798_v4 = vpop.f32.mrf.mxu0  ;;  %v840_v5 = vpop.f32.mrf.mxu1 }
 0x173   : > { %v847_v47 = vadd.f32 %v798_v4, %v725_v40  ;;  %v849_v44 = vadd.f32 %v840_v5, %v727_v46 }
 0x174   : > { %v800_v6 = vpop.f32.mrf.mxu0  ;;  %v1598_v7 = vpop.f32.mrf.mxu1 }
 0x175   : > { %v848_v55 = vadd.f32 %v800_v6, %v726_v43 }
 0x176   : > { %v916_v8 = vpop.f32.mrf.mxu0  ;;  %v959_v9 = vpop.f32.mrf.mxu1 }
 0x177   : > { %v966_v42 = vadd.f32 %v916_v8, %v844_v32  ;;  %v968_v37 = vadd.f32 %v959_v9, %v846_v33 }
 0x178   : > { %v918_v10 = vpop.f32.mrf.mxu0  ;;  %v1603_v11 = vpop.f32.mrf.mxu1 }
 0x179   : > { %v967_v50 = vadd.f32 %v918_v10, %v845_v36 }
 0x17a   : > { %v920_v12 = vpop.f32.mrf.mxu0  ;;  %v962_v13 = vpop.f32.mrf.mxu1 }
 0x17b   : > { %v969_v56 = vadd.f32 %v920_v12, %v847_v47  ;;  %v971_v58 = vadd.f32 %v962_v13, %v849_v44 }
 0x17c   : > { %v922_v14 = vpop.f32.mrf.mxu0  ;;  %v1604_v15 = vpop.f32.mrf.mxu1 }
 0x17d   : > { %v970_v7 = vadd.f32 %v922_v14, %v848_v55  ;;  %v1348_v14 = vpop.permute.xlu1 %1347 }
 0x17e   : > { %v1038_v16 = vpop.f32.mrf.mxu0  ;;  %v1081_v17 = vpop.f32.mrf.mxu1 }
 0x17f   : > { %v1088_v54 = vadd.f32 %v1038_v16, %v966_v42  ;;  %v1090_v51 = vadd.f32 %v1081_v17, %v968_v37 }
 0x180   : > { %v1040_v18 = vpop.f32.mrf.mxu0  ;;  %v1609_v19 = vpop.f32.mrf.mxu1 }
 0x181   : > { %v1089_v63 = vadd.f32 %v1040_v18, %v967_v50 }
 0x182   : > { %v1042_v22 = vpop.f32.mrf.mxu0  ;;  %v1084_v23 = vpop.f32.mrf.mxu1 }
 0x183   : > { %v1091_v8 = vadd.f32 %v1042_v22, %v969_v56  ;;  %v1093_v9 = vadd.f32 %v1084_v23, %v971_v58 }
 0x184   : > { %v1044_v28 = vpop.f32.mrf.mxu0  ;;  %v1610_v29 = vpop.f32.mrf.mxu1 }
 0x185   : > { %v1092_v15 = vadd.f32 %v1044_v28, %v970_v7 }
 0x186   : > { %v1160_v49 = vpop.f32.mrf.mxu0  ;;  %v1203_v53 = vpop.f32.mrf.mxu1 }
 0x187   : > { %v1210_v59 = vadd.f32 %v1160_v49, %v1088_v54  ;;  %v1212_v3 = vadd.f32 %v1203_v53, %v1090_v51 }
 0x188   : > { %v1162_v34 = vpop.f32.mrf.mxu0  ;;  %v1615_v41 = vpop.f32.mrf.mxu1 }
 0x189   : > { %v1211_v11 = vadd.f32 %v1162_v34, %v1089_v63 }
 0x18a   : > { %v1164_v48 = vpop.f32.mrf.mxu0  ;;  %v1206_v38 = vpop.f32.mrf.mxu1 }
 0x18b   : > { %v1213_v16 = vadd.f32 %v1164_v48, %v1091_v8  ;;  %v1215_v13 = vadd.f32 %v1206_v38, %v1093_v9 }
 0x18c   : > { %v1166_v62 = vpop.f32.mrf.mxu0  ;;  %v1616_v52 = vpop.f32.mrf.mxu1 }
 0x18d   : > { %v1214_v22 = vadd.f32 %v1166_v62, %v1092_v15 }
 0x18e   : > { %v1282_v60 = vpop.f32.mrf.mxu0  ;;  %v1325_v4 = vpop.f32.mrf.mxu1 }
 0x18f   : > { %v1332_v5 = vadd.f32 %v1282_v60, %v1210_v59  ;;  %v1334_v10 = vadd.f32 %v1325_v4, %v1212_v3 }
 0x190   : > { %v1284_v6 = vpop.f32.mrf.mxu0  ;;  %v1621_v12 = vpop.f32.mrf.mxu1 }
 0x191   : > { %v1350_v17 = vadd.f32 %v1343_v2, %v1332_v5  ;;  %v1352_v18 = vadd.f32 %v1343_v2, %v1334_v10  ;;  %v1333_v19 = vadd.f32 %v1284_v6, %v1211_v11 }
 0x192   : > { %v1286_v20 = vpop.f32.mrf.mxu0  ;;  %v1328_v21 = vpop.f32.mrf.mxu1 }
 0x193   : > { %1356 = vst [vmem:[%s238_s30] sm:$0xff] %v1350_v17  ;;  %1358 = vst [vmem:[%s238_s30 + $0x10] sm:$0xff] %v1352_v18  ;;  %v1351_v23 = vadd.f32 %v1343_v2, %v1333_v19  ;;  %v1335_v24 = vadd.f32 %v1286_v20, %v1213_v16  ;;  %v1337_v25 = vadd.f32 %v1328_v21, %v1215_v13 }
 0x194   : > { %v1288_v26 = vpop.f32.mrf.mxu0  ;;  %v1622_v27 = vpop.f32.mrf.mxu1 }
 0x195   : > { %1357 = vst [vmem:[%s238_s30 + $0x8] sm:$0xff] %v1351_v23  ;;  %v1353_v28 = vadd.f32 %v1348_v14, %v1335_v24  ;;  %v1355_v29 = vadd.f32 %v1348_v14, %v1337_v25  ;;  %v1336_v30 = vadd.f32 %v1288_v26, %v1214_v22 }
 0x197   : > { %1359 = vst [vmem:[%s238_s30 + $0x18] sm:$0xff] %v1353_v28  ;;  %1361 = vst [vmem:[%s238_s30 + $0x28] sm:$0xff] %v1355_v29  ;;  %v1354_v31 = vadd.f32 %v1348_v14, %v1336_v30 }
 0x199   : > { %1360 = vst [vmem:[%s238_s30 + $0x20] sm:$0xff] %v1354_v31 }
 0x19a PF: > { %s13_s14 = sadd.s32 1, %s1697_s14   ;;  %s1903_s12 = smov %s1693_s13 }
 0x19b   : > { %p10_p5 = scmp.ge.s32.totalorder %s13_s14, 4   ;;  %s1904_s13 = smov %s1906_s15 }
 0x19d   :  { %12 = sbr.rel (!%p10_p5) target bundleno = 2 (0x2), region = 76 }

</bundles_post_ra>
